<compile_context>
chip_gen: v7x
topology: tpu7x:2x2x1
jax: 0.10.0
libtpu: 0.0.40
codegen_flags: <defaults>
</compile_context>

<pallas_src>
import functools

import jax
import jax.numpy as jnp
from jax.experimental import pallas as pl
from jax.experimental.pallas import tpu as pltpu

_LANE = 128
_SUBLANE = 8


def _round_up(n, m):
    return (n + m - 1) // m * m


def _cdiv(a, b):
    return -(-a // b)


def _pad2d(a, rows, cols):
    r, c = a.shape
    if r == rows and c == cols:
        return a
    return jnp.pad(a, ((0, rows - r), (0, cols - c)))


def mlp_kernel(x_ref, w1_ref, b1_ref, w2_ref, b2_ref, w3_ref, b3_ref, o_ref):
    # x / weights are bf16; accumulate in f32 on the MXU; bias + ReLU in f32 on the VPU.
    x = x_ref[...]
    h1 = jnp.dot(x, w1_ref[...], preferred_element_type=jnp.float32) + b1_ref[...]
    h1 = jnp.maximum(h1, 0.0).astype(jnp.bfloat16)
    h2 = jnp.dot(h1, w2_ref[...], preferred_element_type=jnp.float32) + b2_ref[...]
    h2 = jnp.maximum(h2, 0.0).astype(jnp.bfloat16)
    o_ref[...] = (jnp.dot(h2, w3_ref[...], preferred_element_type=jnp.float32)
                  + b3_ref[...]).astype(o_ref.dtype)


def prepare_params(w1, b1, w2, b2, w3, b3):
    """Zero-pad parameters to lane/sublane-friendly shapes and cast weights to bf16.

    Done once at init; zero pads are inert through bias-add, ReLU and the final matmul.
    """
    k_in, hidden = w1.shape
    out_size = w3.shape[1]
    k_in_p = _round_up(k_in, _LANE)
    hidden_p = _round_up(hidden, _LANE)      # 300 -> 384 (keep; optimal on all gens)
    out_p = _round_up(out_size, _LANE)       # 10  -> 128

    w1p = _pad2d(w1, k_in_p, hidden_p).astype(jnp.bfloat16)
    b1p = _pad2d(b1.reshape(1, -1), 1, hidden_p).astype(jnp.float32)
    w2p = _pad2d(w2, hidden_p, hidden_p).astype(jnp.bfloat16)
    b2p = _pad2d(b2.reshape(1, -1), 1, hidden_p).astype(jnp.float32)
    w3p = _pad2d(w3, hidden_p, out_p).astype(jnp.bfloat16)
    b3p = _pad2d(b3.reshape(1, -1), 1, out_p).astype(jnp.float32)
    return (w1p, b1p, w2p, b2p, w3p, b3p), (k_in, out_size)


_vmem_spec = functools.partial(pl.BlockSpec, memory_space=pltpu.MemorySpace.VMEM)


def _pick_batch_tile(b, *, max_tile=1024, min_tile=128):
    """Pick a batch tile so the tile count is even (both v7x TCs get equal work)
    and row zero-padding waste is minimal. Rows are a multiple of 8 sublanes."""
    n_pairs = max(1, _cdiv(b, 2 * max_tile))
    tile = _round_up(_cdiv(b, 2 * n_pairs), _SUBLANE)
    tile = max(min_tile, min(tile, _round_up(max_tile, _SUBLANE)))
    return tile


@functools.partial(jax.jit, static_argnames=("logical_dims", "batch_tile", "single_max"))
def mlp_forward(x, padded_params, *, logical_dims, batch_tile=None, single_max=256):
    w1p, b1p, w2p, b2p, w3p, b3p = padded_params
    k_in, out_size = logical_dims
    k_in_p = w1p.shape[0]
    out_p = w3p.shape[1]

    b, M, Dim = x.shape
    assert M * Dim == k_in, "input feature size mismatch"
    x2d = x.reshape(b, M * Dim).astype(jnp.bfloat16)

    if batch_tile is None and b <= single_max:
        # Small batch: single grid-less call; everything lives in VMEM, no pipelining.
        bp = _round_up(b, _SUBLANE)
        x_pad = _pad2d(x2d, bp, k_in_p)
        out_pad = pl.pallas_call(
            mlp_kernel,
            out_shape=jax.ShapeDtypeStruct((bp, out_p), jnp.bfloat16),
            in_specs=[_vmem_spec()] * 7,
            out_specs=_vmem_spec(),
        )(x_pad, w1p, b1p, w2p, b2p, w3p, b3p)
    else:
        # Large batch: tile the batch axis; weights stay VMEM-resident across tiles;
        # "parallel" semantics lets v7x's two TensorCores split the (even) tile count.
        tile = batch_tile if batch_tile is not None else _pick_batch_tile(b)
        tile = _round_up(tile, _SUBLANE)
        n_tiles = _cdiv(b, tile)
        bp = n_tiles * tile
        x_pad = _pad2d(x2d, bp, k_in_p)
        out_pad = pl.pallas_call(
            mlp_kernel,
            out_shape=jax.ShapeDtypeStruct((bp, out_p), jnp.bfloat16),
            grid=(n_tiles,),
            in_specs=[
                pl.BlockSpec((tile, k_in_p), lambda i: (i, 0)),
                pl.BlockSpec(w1p.shape, lambda i: (0, 0)),
                pl.BlockSpec(b1p.shape, lambda i: (0, 0)),
                pl.BlockSpec(w2p.shape, lambda i: (0, 0)),
                pl.BlockSpec(b2p.shape, lambda i: (0, 0)),
                pl.BlockSpec(w3p.shape, lambda i: (0, 0)),
                pl.BlockSpec(b3p.shape, lambda i: (0, 0)),
            ],
            out_specs=pl.BlockSpec((tile, out_p), lambda i: (i, 0)),
            compiler_params=pltpu.CompilerParams(
                dimension_semantics=("parallel",)),
        )(x_pad, w1p, b1p, w2p, b2p, w3p, b3p)

    # Slice off the zero-padded rows/lanes and return f32 (module's native dtype).
    return out_pad[:b, :out_size].astype(jnp.float32)


def mlp_reference(x, w1, b1, w2, b2, w3, b3):
    b, M, Dim = x.shape
    h = x.reshape(b, M * Dim)
    h = jnp.maximum(h @ w1 + b1, 0.0)
    h = jnp.maximum(h @ w2 + b2, 0.0)
    return h @ w3 + b3


if __name__ == "__main__":
    # config-implied shapes (small): b=2, M=8, Dim=16 -> input_size = 128
    batch, M, Dim = 2, 8, 16
    input_size = M * Dim
    hidden = 300
    output_size = 10

    key = jax.random.PRNGKey(0)
    kx, k1, k2, k3, k4, k5, k6, kx2 = jax.random.split(key, 8)

    x = jax.random.normal(kx, (batch, M, Dim), dtype=jnp.float32)

    # deterministic parameter init (scaled normal); stored as (in, out)
    w1 = jax.random.normal(k1, (input_size, hidden), dtype=jnp.float32) * 0.05
    b1 = jax.random.normal(k2, (1, hidden), dtype=jnp.float32) * 0.01
    w2 = jax.random.normal(k3, (hidden, hidden), dtype=jnp.float32) * 0.05
    b2 = jax.random.normal(k4, (1, hidden), dtype=jnp.float32) * 0.01
    w3 = jax.random.normal(k5, (hidden, output_size), dtype=jnp.float32) * 0.05
    b3 = jax.random.normal(k6, (1, output_size), dtype=jnp.float32) * 0.01

    padded_params, logical_dims = prepare_params(w1, b1, w2, b2, w3, b3)

    # --- small-batch path (grid-less, fully VMEM resident) ---
    out = mlp_forward(x, padded_params, logical_dims=logical_dims)
    jax.block_until_ready(out)
    ref = mlp_reference(x, w1, b1, w2, b2, w3, b3)
    assert out.shape == (batch, output_size)
    # bf16 matmul inputs (f32 accumulation) -> loosened tolerance vs f32 reference.
    assert jnp.allclose(out, ref, atol=5e-2, rtol=5e-2), "small-batch mismatch vs reference"

    # --- large-batch path (batch-tiled grid, even/balanced tile count, weights
    #     VMEM-resident, parallel axis across TensorCores) ---
    big_batch = 600
    x_big = jax.random.normal(kx2, (big_batch, M, Dim), dtype=jnp.float32)
    out_big = mlp_forward(x_big, padded_params, logical_dims=logical_dims)
    jax.block_until_ready(out_big)
    ref_big = mlp_reference(x_big, w1, b1, w2, b2, w3, b3)
    assert out_big.shape == (big_batch, output_size)
    assert jnp.allclose(out_big, ref_big, atol=5e-2, rtol=5e-2), "tiled-batch mismatch vs reference"

    print("KERNEL_OK")
</pallas_src>

<mosaic_0001>
module attributes {stable_mosaic.version = 11 : i64} {
  func.func @mlp_kernel(%arg0: memref<8x128xbf16, #tpu.memory_space<vmem>>, %arg1: memref<128x384xbf16, #tpu.memory_space<vmem>>, %arg2: memref<1x384xf32, #tpu.memory_space<vmem>>, %arg3: memref<384x384xbf16, #tpu.memory_space<vmem>>, %arg4: memref<1x384xf32, #tpu.memory_space<vmem>>, %arg5: memref<384x128xbf16, #tpu.memory_space<vmem>>, %arg6: memref<1x128xf32, #tpu.memory_space<vmem>>, %arg7: memref<8x128xbf16, #tpu.memory_space<vmem>>) attributes {dimension_semantics = [], scalar_prefetch = 0 : i64, scratch_operands = 0 : i64, tpu.core_type = #tpu.core_type<tc>} {
    %c0 = arith.constant 0 : index
    %c0_0 = arith.constant 0 : index
    %0 = vector.load %arg0[%c0, %c0_0] : memref<8x128xbf16, #tpu.memory_space<vmem>>, vector<8x128xbf16>
    %c0_1 = arith.constant 0 : index
    %c0_2 = arith.constant 0 : index
    %1 = vector.load %arg1[%c0_1, %c0_2] : memref<128x384xbf16, #tpu.memory_space<vmem>>, vector<128x384xbf16>
    %cst = arith.constant dense<0.000000e+00> : vector<8x384xf32>
    %2 = tpu.matmul %0, %1, %cst {dimension_numbers = #tpu.dot_dimension_numbers<[1], [0], [0], [1], [0, 0, 1, 1], [], []>} : vector<8x128xbf16>, vector<128x384xbf16>, vector<8x384xf32> -> vector<8x384xf32>
    %c0_3 = arith.constant 0 : index
    %c0_4 = arith.constant 0 : index
    %3 = vector.load %arg2[%c0_3, %c0_4] : memref<1x384xf32, #tpu.memory_space<vmem>>, vector<1x384xf32>
    %4 = vector.broadcast %3 : vector<1x384xf32> to vector<8x384xf32>
    %5 = arith.addf %2, %4 : vector<8x384xf32>
    %cst_5 = arith.constant 0.000000e+00 : f32
    %6 = vector.broadcast %cst_5 : f32 to vector<8x384xf32>
    %7 = arith.maximumf %5, %6 : vector<8x384xf32>
    %8 = arith.truncf %7 : vector<8x384xf32> to vector<8x384xbf16>
    %c0_6 = arith.constant 0 : index
    %c0_7 = arith.constant 0 : index
    %9 = vector.load %arg3[%c0_6, %c0_7] : memref<384x384xbf16, #tpu.memory_space<vmem>>, vector<384x384xbf16>
    %cst_8 = arith.constant dense<0.000000e+00> : vector<8x384xf32>
    %10 = tpu.matmul %8, %9, %cst_8 {dimension_numbers = #tpu.dot_dimension_numbers<[1], [0], [0], [1], [0, 0, 1, 1], [], []>} : vector<8x384xbf16>, vector<384x384xbf16>, vector<8x384xf32> -> vector<8x384xf32>
    %c0_9 = arith.constant 0 : index
    %c0_10 = arith.constant 0 : index
    %11 = vector.load %arg4[%c0_9, %c0_10] : memref<1x384xf32, #tpu.memory_space<vmem>>, vector<1x384xf32>
    %12 = vector.broadcast %11 : vector<1x384xf32> to vector<8x384xf32>
    %13 = arith.addf %10, %12 : vector<8x384xf32>
    %cst_11 = arith.constant 0.000000e+00 : f32
    %14 = vector.broadcast %cst_11 : f32 to vector<8x384xf32>
    %15 = arith.maximumf %13, %14 : vector<8x384xf32>
    %16 = arith.truncf %15 : vector<8x384xf32> to vector<8x384xbf16>
    %c0_12 = arith.constant 0 : index
    %c0_13 = arith.constant 0 : index
    %17 = vector.load %arg5[%c0_12, %c0_13] : memref<384x128xbf16, #tpu.memory_space<vmem>>, vector<384x128xbf16>
    %cst_14 = arith.constant dense<0.000000e+00> : vector<8x128xf32>
    %18 = tpu.matmul %16, %17, %cst_14 {dimension_numbers = #tpu.dot_dimension_numbers<[1], [0], [0], [1], [0, 0, 1, 1], [], []>} : vector<8x384xbf16>, vector<384x128xbf16>, vector<8x128xf32> -> vector<8x128xf32>
    %c0_15 = arith.constant 0 : index
    %c0_16 = arith.constant 0 : index
    %19 = vector.load %arg6[%c0_15, %c0_16] : memref<1x128xf32, #tpu.memory_space<vmem>>, vector<1x128xf32>
    %20 = vector.broadcast %19 : vector<1x128xf32> to vector<8x128xf32>
    %21 = arith.addf %18, %20 : vector<8x128xf32>
    %22 = arith.truncf %21 : vector<8x128xf32> to vector<8x128xbf16>
    %c0_17 = arith.constant 0 : index
    %c0_18 = arith.constant 0 : index
    %23 = vector.load %arg7[%c0_17, %c0_18] : memref<8x128xbf16, #tpu.memory_space<vmem>>, vector<8x128xbf16>
    tpu.vector_store %arg7[%c0_17, %c0_18], %22 {strides = array<i32>} : memref<8x128xbf16, #tpu.memory_space<vmem>>, vector<8x128xbf16>,
    return
  }
}

</mosaic_0001>

<bundles_post_ra>
// kernel: mlp_forward.1
= control target key start
LH: loop header
LB: loop body
LE: loop exit
PB: predicated region body
PF: predicated region fallthrough
CT: control target
= control target key end

     0   :  { %12 = vsyncpa [#allocation3], 0  ;;  %s1932_s0 = inlined_call_operand.vmem [shape: bf16[8,128], index: 0, kind: input, shape index: {}]   ;;  %s1933_s1 = inlined_call_operand.hbm [shape: bf16[128,384], index: 1, kind: input, shape index: {}]   ;;  %s1934_s2 = inlined_call_operand.vmem [shape: f32[1,384], index: 2, kind: input, shape index: {}]   ;;  %s1935_s3 = inlined_call_operand.hbm [shape: bf16[384,384], index: 3, kind: input, shape index: {}]   ;;  %s1936_s4 = inlined_call_operand.vmem [shape: f32[1,384], index: 4, kind: input, shape index: {}]   ;;  %s1937_s5 = inlined_call_operand.hbm [shape: bf16[384,128], index: 5, kind: input, shape index: {}]   ;;  %s1938_s6 = inlined_call_operand.vmem [shape: f32[1,128], index: 6, kind: input, shape index: {}]   ;;  %s1939_s7 = inlined_call_operand.vmem [shape: bf16[8,128], index: 7, kind: output, shape index: {}]  }
   0x1   :  { %13 = vsyncpa [#allocation5], 0  ;;  %s1775_s24 = smov [#allocation4]   ;;  %s1776_s26 = smov [#allocation2]  }
   0x2   :  { %s35_s25 = sshll.u32 %s1775_s24, 4  ;;  %s21_s27 = sshll.u32 %s1776_s26, 4  ;;  %s36_s25 = int_to_ptr.vmem [resolvable:$true] %s35_s25  ;;  %s1825_s27 = int_to_ptr.vmem [resolvable:$true] %s21_s27 }
   0x3   :  { %s1705_s30 = scalar_lea.hbm %s1935_s3, 9216 }
   0x4   :  { %p1706_p0 = scmp.ne.s32.totalorder %s1935_s3, %s1705_s30  ;;  %p1709_p1 = scmp.lt.u32.totalorder %s1705_s30, %s1935_s3 }
   0x6   :  { %p1711_p2 = pnand %p1709_p1, %p1706_p0 }
   0x8   :  { %1714 = shalt.err (!%p1711_p2)
}
   0x9   :  { %s1715_s12 = scalar_lea.vmem %s36_s25, 9216  ;;  %p1720_p4 = scmp.lt.s32.totalorder %s36_s25, %s36_s25 }
   0xa   :  { %p1716_p3 = scmp.ne.s32.totalorder %s36_s25, %s1715_s12  ;;  %p1721_p5 = scmp.lt.s32.totalorder %s1715_s12, %s1715_s12 }
   0xc   :  { %p1722_p6 = por %p1721_p5, %p1720_p4 }
   0xe   :  { %p1723_p7 = pnand %p1722_p6, %p1716_p3 }
  0x10   :  { %1726 = shalt.err (!%p1723_p7)
}
  0x11   :  { %s1777_s13 = smov 192   ;;  %s1778_s14 = smov 12  }
  0x12   :  { %41 = dma.hbm_to_vmem [thread:$0]  %s1935_s3, 9216, %s36_s25, [#allocation5], %s1777_s13, %s1777_s13, %s1778_s14  }
  0x13   :  { %s1727_s19 = scalar_lea.hbm %s1933_s1, 3072 }
  0x14   :  { %p1728_p8 = scmp.ne.s32.totalorder %s1933_s1, %s1727_s19  ;;  %p1731_p9 = scmp.lt.u32.totalorder %s1727_s19, %s1933_s1 }
  0x16   :  { %p1733_p10 = pnand %p1731_p9, %p1728_p8 }
  0x18   :  { %1736 = shalt.err (!%p1733_p10)
}
  0x19   :  { %s1737_s24 = scalar_lea.vmem %s1825_s27, 3072  ;;  %p1742_p12 = scmp.lt.s32.totalorder %s1825_s27, %s1825_s27 }
  0x1a   :  { %p1738_p11 = scmp.ne.s32.totalorder %s1825_s27, %s1737_s24  ;;  %p1743_p13 = scmp.lt.s32.totalorder %s1737_s24, %s1737_s24 }
  0x1c   :  { %p1744_p0 = por %p1743_p13, %p1742_p12 }
  0x1e   :  { %p1745_p1 = pnand %p1744_p0, %p1738_p11 }
  0x20   :  { %1748 = shalt.err (!%p1745_p1)
}
  0x21   :  { %27 = dma.hbm_to_vmem [thread:$0]  %s1933_s1, 3072, %s1825_s27, [#allocation3], %s1777_s13, %s1777_s13, %s1778_s14  }
  0x22   :  { %s1779_s26 = smov [#allocation6]   ;;  %s1749_s8 = scalar_lea.hbm %s1937_s5, 3072 }
  0x23   :  { %s49_s28 = sshll.u32 %s1779_s26, 4  ;;  %p1750_p2 = scmp.ne.s32.totalorder %s1937_s5, %s1749_s8  ;;  %s50_s28 = int_to_ptr.vmem [resolvable:$true] %s49_s28 }
  0x24   :  { %p1753_p3 = scmp.lt.u32.totalorder %s1749_s8, %s1937_s5 }
  0x26   :  { %p1755_p4 = pnand %p1753_p3, %p1750_p2 }
  0x28   :  { %1758 = shalt.err (!%p1755_p4)
}
  0x29   :  { %s1759_s15 = scalar_lea.vmem %s50_s28, 3072  ;;  %p1764_p6 = scmp.lt.s32.totalorder %s50_s28, %s50_s28 }
  0x2a   :  { %p1760_p5 = scmp.ne.s32.totalorder %s50_s28, %s1759_s15  ;;  %p1765_p7 = scmp.lt.s32.totalorder %s1759_s15, %s1759_s15 }
  0x2c   :  { %p1766_p8 = por %p1765_p7, %p1764_p6 }
  0x2e   :  { %p1767_p9 = pnand %p1766_p8, %p1760_p5 }
  0x30   :  { %1770 = shalt.err (!%p1767_p9)
}
  0x31   :  { %s1780_s1 = smov 64   ;;  %s1781_s27 = smov 4  }
  0x32   :  { %55 = dma.hbm_to_vmem [thread:$0]  %s1937_s5, 3072, %s50_s28, [#allocation5], %s1780_s1, %s1780_s1, %s1781_s27  }
  0x33   :  { %1771 = dma.done.wait [#allocation3], 3072  }
  0x34   :  { %1772 = vsyncadd [#allocation3], 4294964224 }
  0x35   :  { %1773 = dma.done.wait [#allocation5], 12288  }
  0x36   :  { %1774 = vsyncadd [#allocation5], 4294955008  ;;  %v1782_v0 = vmov 0.0   ;;  %v1783_v1 = vmov 0   ;;  %vm1784_vm0 = vmmov 0  }
  0x37   :  { %1477 = vmatprep.subr.bf16.mxu1 %v1782_v0  ;;  %278 = vmatprep.mubr.bf16.mxu0 %v1783_v1  ;;  %v1553_v2 = vld [vmem:[#allocation2 + $0x4] ss:$12 sps:$4 sm:$0xff]   ;;  %v1555_v3 = vld [vmem:[#allocation2] ss:$12 sps:$4 sm:$0xff]   ;;  %v1556_v4 = vld [vmem:[#allocation2 + $0x1c] ss:$12 sps:$4 sm:$0xff]  }
  0x38   :  { %1493 = vmatprep.mubr.msk.bf16.mxu1 %vm1784_vm0, %v1782_v0  ;;  %246 = vmatprep.subr.bf16.mxu0 %v1553_v2  ;;  %v1558_v5 = vld [vmem:[#allocation2 + $0x18] ss:$12 sps:$4 sm:$0xff]   ;;  %v1559_v6 = vld [vmem:[#allocation2 + $0x34] ss:$12 sps:$4 sm:$0xff]   ;;  %v1561_v7 = vld [vmem:[#allocation2 + $0x30] ss:$12 sps:$4 sm:$0xff]  }
  0x39   :  { %247 = vmatpush1.bf16.msra.mxu0 %v1555_v3  ;;  %v1562_v8 = vld [vmem:[#allocation2 + $0x4c] ss:$12 sps:$4 sm:$0xff]   ;;  %v1564_v9 = vld [vmem:[#allocation2 + $0x48] ss:$12 sps:$4 sm:$0xff]   ;;  %v1565_v11 = vld [vmem:[#allocation2 + $0x64] ss:$12 sps:$4 sm:$0xff]  }
  0x3a   :  { %248 = vmatprep.subr.bf16.mxu0 %v1556_v4  ;;  %v1577_v10 = vld [vmem:[#allocation2 + $0x8] ss:$12 sps:$4 sm:$0xff]   ;;  %v1578_v12 = vld [vmem:[#allocation2 + $0x20] ss:$12 sps:$4 sm:$0xff]   ;;  %v1579_v15 = vld [vmem:[#allocation2 + $0x38] ss:$12 sps:$4 sm:$0xff]  }
  0x3b   :  { %1478 = vmatpush3.bf16.msra.mxu1 %v1577_v10  ;;  %v1567_v13 = vld [vmem:[#allocation2 + $0x60] ss:$12 sps:$4 sm:$0xff]   ;;  %v1568_v14 = vld [vmem:[#allocation2 + $0x7c] ss:$12 sps:$4 sm:$0xff]   ;;  %v1570_v16 = vld [vmem:[#allocation2 + $0x78] ss:$12 sps:$4 sm:$0xff]  }
  0x3c   :  { %1479 = vmatprep.subr.bf16.mxu1 %v1782_v0  ;;  %v1571_v17 = vld [vmem:[#allocation2 + $0x94] ss:$12 sps:$4 sm:$0xff]   ;;  %v1580_v18 = vld [vmem:[#allocation2 + $0x50] ss:$12 sps:$4 sm:$0xff]   ;;  %v1574_v20 = vld [vmem:[#allocation2 + $0xac] ss:$12 sps:$4 sm:$0xff]  }
  0x3d   :  { %249 = vmatpush1.bf16.msra.mxu0 %v1558_v5  ;;  %v1573_v19 = vld [vmem:[#allocation2 + $0x90] ss:$12 sps:$4 sm:$0xff]   ;;  %v1581_v21 = vld [vmem:[#allocation2 + $0x68] ss:$12 sps:$4 sm:$0xff]   ;;  %v1582_v24 = vld [vmem:[#allocation2 + $0x80] ss:$12 sps:$4 sm:$0xff]  }
  0x3e   :  { %250 = vmatprep.subr.bf16.mxu0 %v1559_v6  ;;  %v1576_v22 = vld [vmem:[#allocation2 + $0xa8] ss:$12 sps:$4 sm:$0xff]   ;;  %v1587_v23 = vld [vmem:[#allocation4 + $0x4] ss:$12 sps:$4 sm:$0xff]   ;;  %v68_v25 = vld [vmem:[%s1932_s0] sm:$0xf] }
  0x3f   :  { %1480 = vmatpush3.bf16.msra.mxu1 %v1578_v12  ;;  %v1585_v26 = vld [vmem:[#allocation4] ss:$12 sps:$4 sm:$0xff]   ;;  %v1590_v27 = vld [vmem:[#allocation4 + $0x1c] ss:$12 sps:$4 sm:$0xff]   ;;  %v1583_v28 = vld [vmem:[#allocation2 + $0x98] ss:$12 sps:$4 sm:$0xff]  }
  0x40   :  { %1481 = vmatprep.subr.bf16.mxu1 %v1782_v0  ;;  %v1588_v29 = vld [vmem:[#allocation4 + $0x18] ss:$12 sps:$4 sm:$0xff]   ;;  %v1593_v30 = vld [vmem:[#allocation4 + $0x34] ss:$12 sps:$4 sm:$0xff]   ;;  %v1584_v31 = vld [vmem:[#allocation2 + $0xb0] ss:$12 sps:$4 sm:$0xff]  }
  0x41   :  { %251 = vmatpush1.bf16.msra.mxu0 %v1561_v7  ;;  %v1612_v32 = vld [vmem:[#allocation4 + $0xc8] ss:$12 sps:$4 sm:$0xff]   ;;  %v1591_v33 = vld [vmem:[#allocation4 + $0x30] ss:$12 sps:$4 sm:$0xff]   ;;  %v1596_v34 = vld [vmem:[#allocation4 + $0x4c] ss:$12 sps:$4 sm:$0xff]  }
  0x42   :  { %252 = vmatprep.subr.bf16.mxu0 %v1562_v8  ;;  %v1613_v35 = vld [vmem:[#allocation4 + $0x8] ss:$12 sps:$4 sm:$0xff]   ;;  %v1617_v36 = vld [vmem:[#allocation4 + $0xe0] ss:$12 sps:$4 sm:$0xff]   ;;  %v1599_v38 = vld [vmem:[#allocation4 + $0x64] ss:$12 sps:$4 sm:$0xff]  }
  0x43   :  { %1482 = vmatpush3.bf16.msra.mxu1 %v1579_v15  ;;  %v1594_v37 = vld [vmem:[#allocation4 + $0x48] ss:$12 sps:$4 sm:$0xff]   ;;  %v1618_v39 = vld [vmem:[#allocation4 + $0x20] ss:$12 sps:$4 sm:$0xff]   ;;  %v1622_v40 = vld [vmem:[#allocation4 + $0xf8] ss:$12 sps:$4 sm:$0xff]  }
  0x44   :  { %1483 = vmatprep.subr.bf16.mxu1 %v1782_v0  ;;  %v1597_v41 = vld [vmem:[#allocation4 + $0x60] ss:$12 sps:$4 sm:$0xff]   ;;  %v1602_v42 = vld [vmem:[#allocation4 + $0x7c] ss:$12 sps:$4 sm:$0xff]   ;;  %v1600_v43 = vld [vmem:[#allocation4 + $0x78] ss:$12 sps:$4 sm:$0xff]  }
  0x45   :  { %253 = vmatpush1.bf16.msra.mxu0 %v1564_v9  ;;  %v1623_v44 = vld [vmem:[#allocation4 + $0x38] ss:$12 sps:$4 sm:$0xff]   ;;  %v1627_v45 = vld [vmem:[#allocation4 + $0x110] ss:$12 sps:$4 sm:$0xff]   ;;  %v1605_v46 = vld [vmem:[#allocation4 + $0x94] ss:$12 sps:$4 sm:$0xff]  }
  0x46   :  { %254 = vmatprep.subr.bf16.mxu0 %v1565_v11  ;;  %v1628_v47 = vld [vmem:[#allocation4 + $0x50] ss:$12 sps:$4 sm:$0xff]   ;;  %v1632_v48 = vld [vmem:[#allocation4 + $0x128] ss:$12 sps:$4 sm:$0xff]   ;;  %v1608_v50 = vld [vmem:[#allocation4 + $0xac] ss:$12 sps:$4 sm:$0xff]  }
  0x47   :  { %1484 = vmatpush3.bf16.msra.mxu1 %v1580_v18  ;;  %v1603_v49 = vld [vmem:[#allocation4 + $0x90] ss:$12 sps:$4 sm:$0xff]   ;;  %v1633_v51 = vld [vmem:[#allocation4 + $0x68] ss:$12 sps:$4 sm:$0xff]   ;;  %v1637_v52 = vld [vmem:[#allocation4 + $0x140] ss:$12 sps:$4 sm:$0xff]  }
  0x48   :  { %1485 = vmatprep.subr.bf16.mxu1 %v1782_v0  ;;  %v1606_v53 = vld [vmem:[#allocation4 + $0xa8] ss:$12 sps:$4 sm:$0xff]   ;;  %v1611_v54 = vld [vmem:[#allocation4 + $0xc4] ss:$12 sps:$4 sm:$0xff]   ;;  %v1638_v55 = vld [vmem:[#allocation4 + $0x80] ss:$12 sps:$4 sm:$0xff]  }
  0x49   :  { %255 = vmatpush1.bf16.msra.mxu0 %v1567_v13  ;;  %v1609_v56 = vld [vmem:[#allocation4 + $0xc0] ss:$12 sps:$4 sm:$0xff]   ;;  %v1616_v57 = vld [vmem:[#allocation4 + $0xdc] ss:$12 sps:$4 sm:$0xff]   ;;  %v1614_v58 = vld [vmem:[#allocation4 + $0xd8] ss:$12 sps:$4 sm:$0xff]  }
  0x4a   :  { %256 = vmatprep.subr.bf16.mxu0 %v1568_v14  ;;  %v1621_v59 = vld [vmem:[#allocation4 + $0xf4] ss:$12 sps:$4 sm:$0xff]   ;;  %v1619_v60 = vld [vmem:[#allocation4 + $0xf0] ss:$12 sps:$4 sm:$0xff]   ;;  %v1626_v61 = vld [vmem:[#allocation4 + $0x10c] ss:$12 sps:$4 sm:$0xff]   ;;  %v103_v14 = vlaneseq }
  0x4b   :  { %1486 = vmatpush3.bf16.msra.mxu1 %v1581_v21  ;;  %v1624_v62 = vld [vmem:[#allocation4 + $0x108] ss:$12 sps:$4 sm:$0xff]   ;;  %v1631_v63 = vld [vmem:[#allocation4 + $0x124] ss:$12 sps:$4 sm:$0xff]   ;;  %v1629_v2 = vld [vmem:[#allocation4 + $0x120] ss:$12 sps:$4 sm:$0xff]  }
  0x4c   :  { %1487 = vmatprep.subr.bf16.mxu1 %v1782_v0  ;;  %v1636_v3 = vld [vmem:[#allocation4 + $0x13c] ss:$12 sps:$4 sm:$0xff]   ;;  %v1634_v4 = vld [vmem:[#allocation4 + $0x138] ss:$12 sps:$4 sm:$0xff]   ;;  %v1641_v5 = vld [vmem:[#allocation4 + $0x154] ss:$12 sps:$4 sm:$0xff]  }
  0x4d   :  { %257 = vmatpush1.bf16.msra.mxu0 %v1570_v16  ;;  %v1642_v6 = vld [vmem:[#allocation4 + $0x158] ss:$12 sps:$4 sm:$0xff]   ;;  %v1639_v7 = vld [vmem:[#allocation4 + $0x150] ss:$12 sps:$4 sm:$0xff]   ;;  %v1644_v11 = vld [vmem:[#allocation4 + $0x168] ss:$12 sps:$4 sm:$0xff]  }
  0x4e   :  { %258 = vmatprep.subr.bf16.mxu0 %v1571_v17  ;;  %v1643_v8 = vld [vmem:[#allocation4 + $0x98] ss:$12 sps:$4 sm:$0xff]   ;;  %v1647_v10 = vld [vmem:[#allocation4 + $0x170] ss:$12 sps:$4 sm:$0xff]   ;;  %v1883_v15 = vshrl.u32 %v103_v14, 7 }
  0x4f   :  { %1488 = vmatpush3.bf16.msra.mxu1 %v1582_v24  ;;  %v1646_v9 = vld [vmem:[#allocation4 + $0x16c] ss:$12 sps:$4 sm:$0xff]   ;;  %v1648_v12 = vld [vmem:[#allocation4 + $0xb0] ss:$12 sps:$4 sm:$0xff]   ;;  %v101_v17 = vld [vmem:[%s1934_s2] sm:$0x7] }
  0x50   :  { %1489 = vmatprep.subr.bf16.mxu1 %v1782_v0  ;;  %v1651_v13 = vld [vmem:[#allocation4 + $0x184] ss:$12 sps:$4 sm:$0xff]   ;;  %v105_v16 = vsub.s32 0, %v1883_v15  ;;  %v109_v18 = vsub.s32 1, %v1883_v15 }
  0x51   :  { %259 = vmatpush1.bf16.msra.mxu0 %v1573_v19  ;;  %v1695_v14 = vld [vmem:[#allocation6 + $0x20] sm:$0xff]  }
  0x52   :  { %260 = vmatprep.subr.bf16.mxu0 %v1574_v20  ;;  %v106_v19 = vrot.slane %v101_v17, %v105_v16  ;;  %v110_v20 = vrot.slane %v101_v17, %v109_v18 }
  0x53   :  { %1490 = vmatpush3.bf16.msra.mxu1 %v1583_v28 }
  0x54   :  { %1491 = vmatprep.subr.bf16.mxu1 %v1782_v0 }
  0x55   :  { %261 = vmatpush1.bf16.msra.mxu0 %v1576_v22 }
  0x56   :  { %830 = vmatprep.subr.bf16.mxu0 %v1587_v23 }
  0x57   :  { %1492 = vmatpush3.bf16.msra.mxu1 %v1584_v31  ;;  %v1652_v31 = vld [vmem:[#allocation4 + $0x188] ss:$12 sps:$4 sm:$0xff]  }
  0x58   :  { %279 = vmatmul.mubr.bf16.vlgmr.msra.gmra.mrb[0].mxu0 %v68_v25  ;;  %1415 = vmatprep.subr.bf16.mxu1 %v1612_v32 }
  0x59   :  { %831 = vmatpush1.bf16.msra.mxu0 %v1585_v26 }
  0x5a   :  { %832 = vmatprep.subr.bf16.mxu0 %v1590_v27  ;;  %1494 = vmatmul.mubr.bf16.vlgmr.msra.gmra.mrb[0].mxu1 %v68_v25 }
  0x5b   :  { %1416 = vmatpush3.bf16.msra.mxu1 %v1613_v35  ;;  %v1656_v35 = vld [vmem:[#allocation4 + $0x1a0] ss:$12 sps:$4 sm:$0xff]  }
  0x5c   :  { %1417 = vmatprep.subr.bf16.mxu1 %v1617_v36 }
  0x5d   :  { %833 = vmatpush1.bf16.msra.mxu0 %v1588_v29 }
  0x5e   :  { %834 = vmatprep.subr.bf16.mxu0 %v1593_v30  ;;  %v1649_v30 = vld [vmem:[#allocation4 + $0x180] ss:$12 sps:$4 sm:$0xff]  }
  0x5f   :  { %1418 = vmatpush3.bf16.msra.mxu1 %v1618_v39 }
  0x60   :  { %1419 = vmatprep.subr.bf16.mxu1 %v1622_v40 }
  0x61   :  { %835 = vmatpush1.bf16.msra.mxu0 %v1591_v33  ;;  %v1655_v33 = vld [vmem:[#allocation4 + $0x19c] ss:$12 sps:$4 sm:$0xff]  }
  0x62   :  { %836 = vmatprep.subr.bf16.mxu0 %v1596_v34  ;;  %v1653_v34 = vld [vmem:[#allocation4 + $0x198] ss:$12 sps:$4 sm:$0xff]  }
  0x63   :  { %1420 = vmatpush3.bf16.msra.mxu1 %v1623_v44  ;;  %v1661_v44 = vld [vmem:[#allocation4 + $0x1c8] ss:$12 sps:$4 sm:$0xff]  }
  0x64   :  { %1421 = vmatprep.subr.bf16.mxu1 %v1627_v45  ;;  %v1664_v45 = vld [vmem:[#allocation4 + $0x1d0] ss:$12 sps:$4 sm:$0xff]  }
  0x65   :  { %837 = vmatpush1.bf16.msra.mxu0 %v1594_v37  ;;  %v1659_v37 = vld [vmem:[#allocation4 + $0x1b4] ss:$12 sps:$4 sm:$0xff]  }
  0x66   :  { %838 = vmatprep.subr.bf16.mxu0 %v1599_v38 }
  0x67   :  { %1422 = vmatpush3.bf16.msra.mxu1 %v1628_v47  ;;  %v1665_v47 = vld [vmem:[#allocation4 + $0x1e0] ss:$12 sps:$4 sm:$0xff]  }
  0x68   :  { %1423 = vmatprep.subr.bf16.mxu1 %v1632_v48  ;;  %v1668_v48 = vld [vmem:[#allocation4 + $0x1e8] ss:$12 sps:$4 sm:$0xff]  }
  0x69   :  { %839 = vmatpush1.bf16.msra.mxu0 %v1597_v41  ;;  %v1657_v41 = vld [vmem:[#allocation4 + $0x1b0] ss:$12 sps:$4 sm:$0xff]  }
  0x6a   :  { %840 = vmatprep.subr.bf16.mxu0 %v1602_v42  ;;  %v1660_v42 = vld [vmem:[#allocation4 + $0x1b8] ss:$12 sps:$4 sm:$0xff]  }
  0x6b   :  { %1424 = vmatpush3.bf16.msra.mxu1 %v1633_v51  ;;  %v1669_v51 = vld [vmem:[#allocation4 + $0x1f8] ss:$12 sps:$4 sm:$0xff]  }
  0x6c   :  { %1425 = vmatprep.subr.bf16.mxu1 %v1637_v52  ;;  %v1672_v52 = vld [vmem:[#allocation4 + $0x200] ss:$12 sps:$4 sm:$0xff]  }
  0x6d   :  { %841 = vmatpush1.bf16.msra.mxu0 %v1600_v43  ;;  %v1663_v43 = vld [vmem:[#allocation4 + $0x1cc] ss:$12 sps:$4 sm:$0xff]  }
  0x6e   :  { %842 = vmatprep.subr.bf16.mxu0 %v1605_v46  ;;  %v113_v46 = vsub.s32 2, %v1883_v15 }
  0x6f   :  { %1426 = vmatpush3.bf16.msra.mxu1 %v1638_v55  ;;  %v1673_v55 = vld [vmem:[#allocation4 + $0x210] ss:$12 sps:$4 sm:$0xff]  }
  0x70   :  { %1427 = vmatprep.subr.bf16.mxu1 %v1642_v6  ;;  %v1688_v6 = vld [vmem:[#allocation6 + $0x50] sm:$0xff]  }
  0x71   :  { %843 = vmatpush1.bf16.msra.mxu0 %v1603_v49  ;;  %v1671_v49 = vld [vmem:[#allocation4 + $0x1fc] ss:$12 sps:$4 sm:$0xff]  }
  0x72   :  { %844 = vmatprep.subr.bf16.mxu0 %v1608_v50  ;;  %v114_v50 = vrot.slane %v101_v17, %v113_v46  ;;  %v1697_v17 = vld [vmem:[#allocation6 + $0x68] sm:$0xff]  }
  0x73   :  { %1428 = vmatpush3.bf16.msra.mxu1 %v1643_v8  ;;  %v1689_v8 = vld [vmem:[#allocation6 + $0x10] sm:$0xff]  }
  0x74   :  { %1429 = vmatprep.subr.bf16.mxu1 %v1647_v10  ;;  %v1690_v10 = vld [vmem:[#allocation6 + $0x98] sm:$0xff]  }
  0x75   :  { %845 = vmatpush1.bf16.msra.mxu0 %v1606_v53  ;;  %v1675_v53 = vld [vmem:[#allocation4 + $0x214] ss:$12 sps:$4 sm:$0xff]  }
  0x76   :  { %846 = vmatprep.subr.bf16.mxu0 %v1611_v54 }
  0x77   :  { %1430 = vmatpush3.bf16.msra.mxu1 %v1648_v12  ;;  %v1694_v12 = vld [vmem:[#allocation6 + $0x60] sm:$0xff]  }
  0x78   :  { %1497 = vmatprep.subr.bf16.mxu1 %v1782_v0 }
  0x79   :  { %847 = vmatpush1.bf16.msra.mxu0 %v1609_v56  ;;  %v1676_v56 = vld [vmem:[#allocation4 + $0x218] ss:$12 sps:$4 sm:$0xff]  }
  0x7a   :  { %848 = vmatprep.subr.bf16.mxu0 %v1616_v57  ;;  %v1679_v57 = vld [vmem:[#allocation4 + $0x22c] ss:$12 sps:$4 sm:$0xff]  }
  0x7d   :  { %849 = vmatpush1.bf16.msra.mxu0 %v1614_v58 }
  0x7e   :  { %850 = vmatprep.subr.bf16.mxu0 %v1621_v59  ;;  %v1677_v59 = vld [vmem:[#allocation4 + $0x228] ss:$12 sps:$4 sm:$0xff]  }
  0x81   :  { %851 = vmatpush1.bf16.msra.mxu0 %v1619_v60  ;;  %v1680_v60 = vld [vmem:[#allocation4 + $0x230] ss:$12 sps:$4 sm:$0xff]  }
  0x82   :  { %852 = vmatprep.subr.bf16.mxu0 %v1626_v61 }
  0x85   :  { %853 = vmatpush1.bf16.msra.mxu0 %v1624_v62  ;;  %v1681_v62 = vld [vmem:[#allocation6 + $0x80] sm:$0xff]  }
  0x86   :  { %854 = vmatprep.subr.bf16.mxu0 %v1631_v63  ;;  %v1682_v63 = vld [vmem:[#allocation6 + $0x40] sm:$0xff]  }
  0x89   :  { %855 = vmatpush1.bf16.msra.mxu0 %v1629_v2  ;;  %v1683_v2 = vld [vmem:[#allocation6] sm:$0xff]  }
  0x8a   :  { %856 = vmatprep.subr.bf16.mxu0 %v1636_v3  ;;  %v1685_v3 = vld [vmem:[#allocation6 + $0x48] sm:$0xff]  }
  0x8d   :  { %857 = vmatpush1.bf16.msra.mxu0 %v1634_v4  ;;  %v1684_v4 = vld [vmem:[#allocation6 + $0x88] sm:$0xff]  }
  0x8e   :  { %858 = vmatprep.subr.bf16.mxu0 %v1641_v5  ;;  %v1686_v5 = vld [vmem:[#allocation6 + $0x8] sm:$0xff]  }
  0x91   :  { %859 = vmatpush1.bf16.msra.mxu0 %v1639_v7  ;;  %v1687_v7 = vld [vmem:[#allocation6 + $0x90] sm:$0xff]  }
  0x92   :  { %860 = vmatprep.subr.bf16.mxu0 %v1646_v9  ;;  %v1691_v9 = vld [vmem:[#allocation6 + $0x58] sm:$0xff]  }
  0x95   :  { %861 = vmatpush1.bf16.msra.mxu0 %v1644_v11  ;;  %v1692_v11 = vld [vmem:[#allocation6 + $0x18] sm:$0xff]  }
  0x96   :  { %871 = vmatprep.subr.bf16.mxu0 %v1651_v13  ;;  %v1693_v13 = vld [vmem:[#allocation6 + $0xa0] sm:$0xff]  }
 0x12b   :  { %v280_v21 = vpop.f32.mrb[0].mxu0 }
 0x12c   :  { %v281_v22 = vadd.f32 %v280_v21, %v106_v19  ;;  %v282_v23 = vpop.f32.mrb[1].mxu0  ;;  %v1696_v19 = vld [vmem:[#allocation6 + $0xa8] sm:$0xff]   ;;  %v1699_v21 = vld [vmem:[#allocation6 + $0xb0] sm:$0xff]  }
 0x12d   :  { %v283_v24 = vadd.f32 %v282_v23, %v110_v20  ;;  %v284_v25 = vpop.f32.mrb[2].mxu0  ;;  %v321_v36 = vpop.f32.mrb[0].mxu1  ;;  %v1698_v20 = vld [vmem:[#allocation6 + $0x28] sm:$0xff]   ;;  %v1701_v23 = vld [vmem:[#allocation6 + $0x30] sm:$0xff]  }
 0x12e   :  { %v327_v26 = vmax.f32 %v281_v22, 0.0  ;;  %v285_v27 = vpop.f32.mrb[3].mxu0  ;;  %v1495_v38 = vpop.f32.mrb[1].mxu1  ;;  %v322_v54 = vadd.f32 %v321_v36, %v114_v50  ;;  %v1700_v22 = vld [vmem:[#allocation6 + $0x70] sm:$0xff]   ;;  %v1703_v25 = vld [vmem:[#allocation6 + $0x78] sm:$0xff]  }
 0x12f   :  { %v328_v28 = vmax.f32 %v283_v24, 0.0  ;;  %v324_v39 = vpop.f32.mrb[2].mxu1  ;;  %v1702_v24 = vld [vmem:[#allocation6 + $0xb8] sm:$0xff]  }
 0x130   :  { %v330_v32 = vpack.c.bf16 %v327_v26, %v327_v26  ;;  %v1496_v40 = vpop.f32.mrb[3].mxu1  ;;  %v329_v58 = vmax.f32 %v322_v54, 0.0  ;;  %v1704_v26 = vld [vmem:[#allocation6 + $0x38] sm:$0xff]  }
 0x131   :  { %v331_v29 = vpack.c.bf16 %v328_v28, %v328_v28 }
 0x132   :  { %v332_v61 = vpack.c.bf16 %v329_v58, %v329_v58 }
 0x133   :  { %862 = vmatprep.mubr.bf16.mxu0 %v331_v29  ;;  %944 = vmatprep.mubr.bf16.mxu1 %v331_v29 }
 0x134   :  { %863 = vmatmul.mubr.bf16.vlgmr.msra.gmra.mrb[4].mxu0 %v330_v32  ;;  %945 = vmatmul.mubr.bf16.vlgmr.msra.gmra.mrb[4].mxu1 %v330_v32  ;;  %v429_v32 = vld [vmem:[%s1936_s4] sm:$0x7] }
 0x135   :  { %872 = vmatpush1.bf16.msra.mxu0 %v1649_v30  ;;  %1498 = vmatpush3.bf16.msra.mxu1 %v1652_v31 }
 0x136   :  { %873 = vmatprep.subr.bf16.mxu0 %v1655_v33  ;;  %1499 = vmatprep.subr.bf16.mxu1 %v1782_v0  ;;  %v442_v33 = vrot.slane %v429_v32, %v113_v46 }
 0x137   :  { %903 = vmatprep.mubr.bf16.mxu0 %v1783_v1  ;;  %1513 = vmatprep.mubr.msk.bf16.mxu1 %vm1784_vm0, %v1782_v0  ;;  %v1667_v1 = vld [vmem:[#allocation4 + $0x1e4] ss:$12 sps:$4 sm:$0xff]  }
 0x139   :  { %874 = vmatpush1.bf16.msra.mxu0 %v1653_v34  ;;  %1500 = vmatpush3.bf16.msra.mxu1 %v1656_v35  ;;  %v438_v34 = vrot.slane %v429_v32, %v109_v18 }
 0x13a   :  { %875 = vmatprep.subr.bf16.mxu0 %v1659_v37  ;;  %1501 = vmatprep.subr.bf16.mxu1 %v1782_v0 }
 0x13d   :  { %876 = vmatpush1.bf16.msra.mxu0 %v1657_v41  ;;  %1502 = vmatpush3.bf16.msra.mxu1 %v1660_v42 }
 0x13e   :  { %877 = vmatprep.subr.bf16.mxu0 %v1663_v43  ;;  %1503 = vmatprep.subr.bf16.mxu1 %v1782_v0 }
 0x141   :  { %878 = vmatpush1.bf16.msra.mxu0 %v1661_v44  ;;  %1504 = vmatpush3.bf16.msra.mxu1 %v1664_v45 }
 0x142   :  { %879 = vmatprep.subr.bf16.mxu0 %v1667_v1  ;;  %1505 = vmatprep.subr.bf16.mxu1 %v1782_v0 }
 0x145   :  { %880 = vmatpush1.bf16.msra.mxu0 %v1665_v47  ;;  %1506 = vmatpush3.bf16.msra.mxu1 %v1668_v48 }
 0x146   :  { %881 = vmatprep.subr.bf16.mxu0 %v1671_v49  ;;  %1507 = vmatprep.subr.bf16.mxu1 %v1782_v0 }
 0x149   :  { %882 = vmatpush1.bf16.msra.mxu0 %v1669_v51  ;;  %1508 = vmatpush3.bf16.msra.mxu1 %v1672_v52 }
 0x14a   :  { %883 = vmatprep.subr.bf16.mxu0 %v1675_v53  ;;  %1509 = vmatprep.subr.bf16.mxu1 %v1782_v0  ;;  %v1381_v53 = vld [vmem:[%s1938_s6] ss:$0 sm:$0xff] }
 0x14d   :  { %884 = vmatpush1.bf16.msra.mxu0 %v1673_v55  ;;  %1510 = vmatpush3.bf16.msra.mxu1 %v1676_v56 }
 0x14e   :  { %885 = vmatprep.subr.bf16.mxu0 %v1679_v57  ;;  %1511 = vmatprep.subr.bf16.mxu1 %v1782_v0 }
 0x151   :  { %886 = vmatpush1.bf16.msra.mxu0 %v1677_v59  ;;  %1512 = vmatpush3.bf16.msra.mxu1 %v1680_v60 }
 0x152   :  { %1517 = vmatprep.subr.bf16.mxu0 %v1782_v0  ;;  %1446 = vmatprep.subr.bf16.mxu1 %v1682_v63 }
 0x154   :  { %904 = vmatmul.mubr.bf16.vlgmr.msra.gmra.mrb[4].mxu0 %v332_v61  ;;  %1514 = vmatmul.mubr.bf16.vlgmr.msra.gmra.mrb[8].mxu1 %v332_v61 }
 0x155   :  { %1533 = vmatprep.mubr.msk.bf16.mxu0 %vm1784_vm0, %v1782_v0  ;;  %1518 = vmatpush3.bf16.msra.mxu0 %v1681_v62 }
 0x156   :  { %1447 = vmatpush3.bf16.msra.mxu1 %v1683_v2  ;;  %1519 = vmatprep.subr.bf16.mxu0 %v1782_v0 }
 0x157   :  { %1448 = vmatprep.subr.bf16.mxu1 %v1685_v3 }
 0x159   :  { %1520 = vmatpush3.bf16.msra.mxu0 %v1684_v4 }
 0x15a   :  { %1449 = vmatpush3.bf16.msra.mxu1 %v1686_v5  ;;  %1521 = vmatprep.subr.bf16.mxu0 %v1782_v0 }
 0x15b   :  { %1450 = vmatprep.subr.bf16.mxu1 %v1688_v6 }
 0x15d   :  { %1522 = vmatpush3.bf16.msra.mxu0 %v1687_v7 }
 0x15e   :  { %1451 = vmatpush3.bf16.msra.mxu1 %v1689_v8  ;;  %1523 = vmatprep.subr.bf16.mxu0 %v1782_v0 }
 0x15f   :  { %1452 = vmatprep.subr.bf16.mxu1 %v1691_v9 }
 0x161   :  { %1524 = vmatpush3.bf16.msra.mxu0 %v1690_v10 }
 0x162   :  { %1453 = vmatpush3.bf16.msra.mxu1 %v1692_v11  ;;  %1525 = vmatprep.subr.bf16.mxu0 %v1782_v0 }
 0x163   :  { %1454 = vmatprep.subr.bf16.mxu1 %v1694_v12 }
 0x165   :  { %1526 = vmatpush3.bf16.msra.mxu0 %v1693_v13 }
 0x166   :  { %1455 = vmatpush3.bf16.msra.mxu1 %v1695_v14  ;;  %1527 = vmatprep.subr.bf16.mxu0 %v1782_v0 }
 0x167   :  { %1456 = vmatprep.subr.bf16.mxu1 %v1697_v17 }
 0x169   :  { %1528 = vmatpush3.bf16.msra.mxu0 %v1696_v19 }
 0x16a   :  { %1457 = vmatpush3.bf16.msra.mxu1 %v1698_v20  ;;  %1529 = vmatprep.subr.bf16.mxu0 %v1782_v0 }
 0x16b   :  { %1458 = vmatprep.subr.bf16.mxu1 %v1700_v22 }
 0x16d   :  { %1530 = vmatpush3.bf16.msra.mxu0 %v1699_v21 }
 0x16e   :  { %1531 = vmatprep.subr.bf16.mxu0 %v1782_v0  ;;  %1459 = vmatpush3.bf16.msra.mxu1 %v1701_v23  ;;  %v434_v0 = vrot.slane %v429_v32, %v105_v16 }
 0x16f   :  { %1460 = vmatprep.subr.bf16.mxu1 %v1703_v25 }
 0x171   :  { %1532 = vmatpush3.bf16.msra.mxu0 %v1702_v24 }
 0x172   :  { %1461 = vmatpush3.bf16.msra.mxu1 %v1704_v26 }
 0x207   :  { %v1431_v27 = vpop.f32.mrb[4].mxu1 }
 0x208   :  { %v1432_v28 = vpop.f32.mrb[5].mxu1 }
 0x209   :  { %v1433_v29 = vadd.f32 %v1432_v28, %v1431_v27  ;;  %v1434_v30 = vpop.f32.mrb[6].mxu1 }
 0x20a   :  { %v1435_v31 = vpop.f32.mrb[7].mxu1 }
 0x20b   :  { %v947_v35 = vadd.f32 %v1433_v29, %v442_v33 }
 0x227   :  { %v905_v36 = vpop.f32.mrb[4].mxu0  ;;  %v986_v37 = vpop.f32.mrb[8].mxu1 }
 0x228   :  { %v1537_v38 = vadd.f32 %v905_v36, %v434_v0  ;;  %v987_v39 = vadd.f32 %v986_v37, %v947_v35  ;;  %v907_v40 = vpop.f32.mrb[5].mxu0  ;;  %v1515_v41 = vpop.f32.mrb[9].mxu1 }
 0x229   :  { %v1538_v42 = vadd.f32 %v907_v40, %v438_v34  ;;  %v909_v43 = vpop.f32.mrb[6].mxu0  ;;  %v989_v44 = vpop.f32.mrb[10].mxu1 }
 0x22a   :  { %v992_v45 = vmax.f32 %v1537_v38, 0.0  ;;  %v994_v1 = vmax.f32 %v987_v39, 0.0  ;;  %v910_v47 = vpop.f32.mrb[7].mxu0  ;;  %v1516_v46 = vpop.f32.mrb[11].mxu1 }
 0x22b   :  { %v993_v48 = vmax.f32 %v1538_v42, 0.0 }
 0x22c   :  { %v997_v49 = vpack.c.bf16 %v994_v1, %v994_v1  ;;  %v995_v50 = vpack.c.bf16 %v992_v45, %v992_v45 }
 0x22d   :  { %v996_v16 = vpack.c.bf16 %v993_v48, %v993_v48 }
 0x22e   :  { %1534 = vmatmul.mubr.bf16.vlgmr.msra.gmra.mrb[8].mxu0 %v997_v49 }
 0x22f   :  { %1229 = vmatprep.mubr.bf16.mxu1 %v996_v16 }
 0x230   :  { %1230 = vmatmul.mubr.bf16.vlgmr.msra.gmra.mrb[12].mxu1 %v995_v50 }
 0x301   :  { %v1271_v15 = vpop.f32.mrb[8].mxu0 }
 0x302   :  { %v1535_v18 = vpop.f32.mrb[9].mxu0 }
 0x303   :  { %v1462_v51 = vpop.f32.mrb[12].mxu1  ;;  %v1274_v52 = vpop.f32.mrb[10].mxu0 }
 0x304   :  { %v1463_v54 = vpop.f32.mrb[13].mxu1  ;;  %v1536_v55 = vpop.f32.mrb[11].mxu0 }
 0x305   :  { %v1464_v56 = vadd.f32 %v1463_v54, %v1462_v51  ;;  %v1465_v57 = vpop.f32.mrb[14].mxu1 }
 0x306   :  { %v1466_v58 = vpop.f32.mrb[15].mxu1 }
 0x307   :  { %v1232_v59 = vadd.f32 %v1464_v56, %v1381_v53 }
 0x309   :  { %v1272_v60 = vadd.f32 %v1271_v15, %v1232_v59 }
 0x30b   :  { %v1277_v61 = vpack.c.bf16 %v1272_v60, %v1272_v60 }
 0x30d   :  { %1278 = vst [vmem:[%s1939_s7] sm:$0xf] %v1277_v61 }
 0x30e   :  { %1283 = vsyncpa [#allocation3], 1 }
 0x30f   :  { %1284 = vsyncpa [#allocation5], 1 }

</bundles_post_ra>
